<compile_context>
chip_gen: v7x
topology: tpu7x:2x2x1
jax: 0.10.0
libtpu: 0.0.40
codegen_flags: <defaults>
</compile_context>

<pallas_src>
import functools

import jax
import jax.numpy as jnp
from jax.experimental import pallas as pl
from jax.experimental.pallas import tpu as pltpu


def _round_up(n: int, m: int) -> int:
    return ((n + m - 1) // m) * m


def rnn_jordan_kernel(xy_ref, w1_ref, bih_ref, why_ref, bhy_ref,
                      y_out_ref, h_out_ref):
    # Fused hidden-state matmul: [x | y] @ [Wih ; Whh]  (bf16 in, f32 acc).
    pre_h = (
        jnp.dot(xy_ref[...], w1_ref[...], preferred_element_type=jnp.float32)
        + bih_ref[...]                       # (bm, Hp) f32, lane-aligned vadd
    )
    h = jnp.tanh(pre_h)                      # f32 activation (v5e-safe)
    h_out_ref[...] = h.astype(h_out_ref.dtype)

    # Output: sigmoid(h @ Why + bhy); cast h to bf16 only for the MXU input.
    pre_y = (
        jnp.dot(h.astype(why_ref.dtype), why_ref[...],
                preferred_element_type=jnp.float32)
        + bhy_ref[...]
    )
    y_out_ref[...] = jax.nn.sigmoid(pre_y).astype(y_out_ref.dtype)


def rnn_jordan(x, y, Wih, Whh, bih, Why, bhy, *, block_m: int = 128):
    """Jordan-RNN cell forward via a single Pallas call, batch tiled on a grid."""
    B, In = x.shape
    H = Wih.shape[1]        # hidden size
    Ho = Why.shape[1]       # output size (== H in the square module case)

    # Padded, MXU/lane-friendly sizes.
    Hp = _round_up(H, 128)
    Hop = _round_up(Ho, 128)
    K1p = _round_up(In + H, 128)
    bm = min(block_m, _round_up(B, 8))
    Bp = _round_up(B, bm)
    grid = (Bp // bm,)

    f32, bf16 = jnp.float32, jnp.bfloat16

    # Fused + padded inputs and weights (layout plumbing, done once per call).
    xy = jnp.zeros((Bp, K1p), f32)
    xy = xy.at[:B, :In].set(x).at[:B, In:In + H].set(y).astype(bf16)

    W1 = jnp.zeros((K1p, Hp), f32)
    W1 = W1.at[:In, :H].set(Wih).at[In:In + H, :H].set(Whh).astype(bf16)

    W2 = jnp.zeros((Hp, Hop), f32).at[:H, :Ho].set(Why).astype(bf16)

    # Biases pre-broadcast to one batch block, kept in f32.
    bih_b = jnp.zeros((bm, Hp), f32).at[:, :H].set(bih[None, :])
    bhy_b = jnp.zeros((bm, Hop), f32).at[:, :Ho].set(bhy[None, :])

    cost = pl.CostEstimate(
        flops=2 * Bp * K1p * Hp + 2 * Bp * Hp * Hop,
        transcendentals=Bp * (Hp + Hop),
        bytes_accessed=(xy.size * 2 + W1.size * 2 + W2.size * 2
                        + bih_b.size * 4 + bhy_b.size * 4
                        + Bp * Hp * 4 + Bp * Hop * 4),
    )

    y_out, h_out = pl.pallas_call(
        rnn_jordan_kernel,
        out_shape=(
            jax.ShapeDtypeStruct((Bp, Hop), f32),   # y_out (padded)
            jax.ShapeDtypeStruct((Bp, Hp), f32),    # h     (padded)
        ),
        grid=grid,
        in_specs=[
            pl.BlockSpec((bm, K1p), lambda i: (i, 0)),   # [x|y] block
            pl.BlockSpec((K1p, Hp), lambda i: (0, 0)),   # fused W1 (resident)
            pl.BlockSpec((bm, Hp), lambda i: (0, 0)),    # bih block (resident)
            pl.BlockSpec((Hp, Hop), lambda i: (0, 0)),   # Why (resident)
            pl.BlockSpec((bm, Hop), lambda i: (0, 0)),   # bhy block (resident)
        ],
        out_specs=(
            pl.BlockSpec((bm, Hop), lambda i: (i, 0)),
            pl.BlockSpec((bm, Hp), lambda i: (i, 0)),
        ),
        compiler_params=pltpu.CompilerParams(
            dimension_semantics=("parallel",)),
        cost_estimate=cost,
    )(xy, W1, bih_b, W2, bhy_b)

    # Strip padding.
    return y_out[:B, :Ho], h_out[:B, :H]


def rnn_jordan_ref_f32(x, y, Wih, Whh, bih, Why, bhy):
    """Pure-JAX f32 reference matching the PyTorch module exactly."""
    h = jnp.tanh(x @ Wih + y @ Whh + bih)
    y_new = jax.nn.sigmoid(h @ Why + bhy)
    return y_new, h


def rnn_jordan_ref_bf16(x, y, Wih, Whh, bih, Why, bhy):
    """Reference with the same bf16-input / f32-accumulate quantization."""
    q = lambda a: a.astype(jnp.bfloat16)
    h = jnp.tanh(
        jnp.dot(q(x), q(Wih), preferred_element_type=jnp.float32)
        + jnp.dot(q(y), q(Whh), preferred_element_type=jnp.float32)
        + bih)
    y_new = jax.nn.sigmoid(
        jnp.dot(q(h), q(Why), preferred_element_type=jnp.float32) + bhy)
    return y_new, h


if __name__ == "__main__":
    # Small shapes consistent with the module's forward:
    #   x: (batch, input_size), y: (batch, hidden_size)
    B, input_size, hidden_size = 8, 16, 32

    key = jax.random.PRNGKey(0)
    kx, ky, k1, k2, k3, k4, k5 = jax.random.split(key, 7)

    x = jax.random.normal(kx, (B, input_size), dtype=jnp.float32)
    y = jax.random.normal(ky, (B, hidden_size), dtype=jnp.float32)

    # Deterministic parameter init (synthetic, not a checkpoint).
    Wih = 0.1 * jax.random.normal(k1, (input_size, hidden_size), dtype=jnp.float32)
    Whh = 0.1 * jax.random.normal(k2, (hidden_size, hidden_size), dtype=jnp.float32)
    bih = 0.1 * jax.random.normal(k3, (hidden_size,), dtype=jnp.float32)
    Why = 0.1 * jax.random.normal(k4, (hidden_size, hidden_size), dtype=jnp.float32)
    bhy = 0.1 * jax.random.normal(k5, (hidden_size,), dtype=jnp.float32)

    run = jax.jit(functools.partial(rnn_jordan, block_m=128))
    y_out, h_out = run(x, y, Wih, Whh, bih, Why, bhy)
    jax.block_until_ready((y_out, h_out))

    # Tight check against a reference using the same bf16 quantization.
    y_q, h_q = rnn_jordan_ref_bf16(x, y, Wih, Whh, bih, Why, bhy)
    assert jnp.allclose(y_out, y_q, atol=1e-3, rtol=1e-3)
    assert jnp.allclose(h_out, h_q, atol=1e-3, rtol=1e-3)

    # Loose check against the exact f32 (PyTorch-equivalent) reference.
    y_ref, h_ref = rnn_jordan_ref_f32(x, y, Wih, Whh, bih, Why, bhy)
    assert jnp.allclose(y_out, y_ref, atol=2e-2, rtol=2e-2)
    assert jnp.allclose(h_out, h_ref, atol=2e-2, rtol=2e-2)

    print("KERNEL_OK")
</pallas_src>

<mosaic_0001>
module attributes {stable_mosaic.version = 11 : i64} {
  func.func @rnn_jordan_kernel(%arg0: i32, %arg1: memref<8x128xbf16, #tpu.memory_space<vmem>>, %arg2: memref<128x128xbf16, #tpu.memory_space<vmem>>, %arg3: memref<8x128xf32, #tpu.memory_space<vmem>>, %arg4: memref<128x128xbf16, #tpu.memory_space<vmem>>, %arg5: memref<8x128xf32, #tpu.memory_space<vmem>>, %arg6: memref<8x128xf32, #tpu.memory_space<vmem>>, %arg7: memref<8x128xf32, #tpu.memory_space<vmem>>) attributes {dimension_semantics = [#tpu.dimension_semantics<parallel>], iteration_bounds = array<i64: 1>, scalar_prefetch = 0 : i64, scratch_operands = 0 : i64, tpu.core_type = #tpu.core_type<tc>, window_params = [{transform_indices = @transform_0, window_bounds = array<i64: 8, 128>}, {pipeline_mode = #tpu.pipeline_mode<synchronous>, transform_indices = @transform_1, window_bounds = array<i64: 128, 128>}, {pipeline_mode = #tpu.pipeline_mode<synchronous>, transform_indices = @transform_2, window_bounds = array<i64: 8, 128>}, {pipeline_mode = #tpu.pipeline_mode<synchronous>, transform_indices = @transform_3, window_bounds = array<i64: 128, 128>}, {pipeline_mode = #tpu.pipeline_mode<synchronous>, transform_indices = @transform_4, window_bounds = array<i64: 8, 128>}, {transform_indices = @transform_5, window_bounds = array<i64: 8, 128>}, {transform_indices = @transform_6, window_bounds = array<i64: 8, 128>}]} {
    %c0 = arith.constant 0 : index
    %c0_0 = arith.constant 0 : index
    %0 = vector.load %arg1[%c0, %c0_0] : memref<8x128xbf16, #tpu.memory_space<vmem>>, vector<8x128xbf16>
    %c0_1 = arith.constant 0 : index
    %c0_2 = arith.constant 0 : index
    %1 = vector.load %arg2[%c0_1, %c0_2] : memref<128x128xbf16, #tpu.memory_space<vmem>>, vector<128x128xbf16>
    %cst = arith.constant dense<0.000000e+00> : vector<8x128xf32>
    %2 = tpu.matmul %0, %1, %cst {dimension_numbers = #tpu.dot_dimension_numbers<[1], [0], [0], [1], [0, 0, 1, 1], [], []>} : vector<8x128xbf16>, vector<128x128xbf16>, vector<8x128xf32> -> vector<8x128xf32>
    %c0_3 = arith.constant 0 : index
    %c0_4 = arith.constant 0 : index
    %3 = vector.load %arg3[%c0_3, %c0_4] : memref<8x128xf32, #tpu.memory_space<vmem>>, vector<8x128xf32>
    %4 = arith.addf %2, %3 : vector<8x128xf32>
    %5 = math.tanh %4 : vector<8x128xf32>
    %c0_5 = arith.constant 0 : index
    %c0_6 = arith.constant 0 : index
    %6 = vector.load %arg7[%c0_5, %c0_6] : memref<8x128xf32, #tpu.memory_space<vmem>>, vector<8x128xf32>
    tpu.vector_store %arg7[%c0_5, %c0_6], %5 {strides = array<i32>} : memref<8x128xf32, #tpu.memory_space<vmem>>, vector<8x128xf32>,
    %7 = arith.truncf %5 : vector<8x128xf32> to vector<8x128xbf16>
    %c0_7 = arith.constant 0 : index
    %c0_8 = arith.constant 0 : index
    %8 = vector.load %arg4[%c0_7, %c0_8] : memref<128x128xbf16, #tpu.memory_space<vmem>>, vector<128x128xbf16>
    %cst_9 = arith.constant dense<0.000000e+00> : vector<8x128xf32>
    %9 = tpu.matmul %7, %8, %cst_9 {dimension_numbers = #tpu.dot_dimension_numbers<[1], [0], [0], [1], [0, 0, 1, 1], [], []>} : vector<8x128xbf16>, vector<128x128xbf16>, vector<8x128xf32> -> vector<8x128xf32>
    %c0_10 = arith.constant 0 : index
    %c0_11 = arith.constant 0 : index
    %10 = vector.load %arg5[%c0_10, %c0_11] : memref<8x128xf32, #tpu.memory_space<vmem>>, vector<8x128xf32>
    %11 = arith.addf %9, %10 : vector<8x128xf32>
    %12 = arith.negf %11 : vector<8x128xf32>
    %13 = math.exp %12 : vector<8x128xf32>
    %cst_12 = arith.constant 1.000000e+00 : f32
    %14 = vector.broadcast %cst_12 : f32 to vector<8x128xf32>
    %15 = arith.addf %14, %13 : vector<8x128xf32>
    %16 = arith.divf %14, %15 : vector<8x128xf32>
    %c0_13 = arith.constant 0 : index
    %c0_14 = arith.constant 0 : index
    %17 = vector.load %arg6[%c0_13, %c0_14] : memref<8x128xf32, #tpu.memory_space<vmem>>, vector<8x128xf32>
    tpu.vector_store %arg6[%c0_13, %c0_14], %16 {strides = array<i32>} : memref<8x128xf32, #tpu.memory_space<vmem>>, vector<8x128xf32>,
    return
  }
  func.func @transform_0(%arg0: i32) -> (i32, i32) {
    %c0_i32 = arith.constant 0 : i32
    %c0_i32_0 = arith.constant 0 : i32
    return %arg0, %c0_i32 : i32, i32
  }
  func.func @transform_1(%arg0: i32) -> (i32, i32) {
    %c0_i32 = arith.constant 0 : i32
    %c0_i32_0 = arith.constant 0 : i32
    %c0_i32_1 = arith.constant 0 : i32
    return %c0_i32, %c0_i32_0 : i32, i32
  }
  func.func @transform_2(%arg0: i32) -> (i32, i32) {
    %c0_i32 = arith.constant 0 : i32
    %c0_i32_0 = arith.constant 0 : i32
    %c0_i32_1 = arith.constant 0 : i32
    return %c0_i32, %c0_i32_0 : i32, i32
  }
  func.func @transform_3(%arg0: i32) -> (i32, i32) {
    %c0_i32 = arith.constant 0 : i32
    %c0_i32_0 = arith.constant 0 : i32
    %c0_i32_1 = arith.constant 0 : i32
    return %c0_i32, %c0_i32_0 : i32, i32
  }
  func.func @transform_4(%arg0: i32) -> (i32, i32) {
    %c0_i32 = arith.constant 0 : i32
    %c0_i32_0 = arith.constant 0 : i32
    %c0_i32_1 = arith.constant 0 : i32
    return %c0_i32, %c0_i32_0 : i32, i32
  }
  func.func @transform_5(%arg0: i32) -> (i32, i32) {
    %c0_i32 = arith.constant 0 : i32
    %c0_i32_0 = arith.constant 0 : i32
    return %arg0, %c0_i32 : i32, i32
  }
  func.func @transform_6(%arg0: i32) -> (i32, i32) {
    %c0_i32 = arith.constant 0 : i32
    %c0_i32_0 = arith.constant 0 : i32
    return %arg0, %c0_i32 : i32, i32
  }
}

</mosaic_0001>

<bundles_post_ra>
// kernel: rnn_jordan.1
= control target key start
LH: loop header
LB: loop body
LE: loop exit
PB: predicated region body
PF: predicated region fallthrough
CT: control target
= control target key end

     0   :  { %12 = vsyncpa [#allocation3], 0  ;;  %v423_v1 = vmov 0.0   ;;  %vm424_vm0 = vmmov 0   ;;  %s543_s0 = inlined_call_operand.vmem [shape: bf16[8,128], index: 0, kind: input, shape index: {}]   ;;  %s544_s1 = inlined_call_operand.vmem [shape: bf16[128,128], index: 1, kind: input, shape index: {}]   ;;  %s545_s2 = inlined_call_operand.vmem [shape: f32[8,128], index: 2, kind: input, shape index: {}]   ;;  %s546_s3 = inlined_call_operand.vmem [shape: bf16[128,128], index: 3, kind: input, shape index: {}]   ;;  %s547_s4 = inlined_call_operand.vmem [shape: f32[8,128], index: 4, kind: input, shape index: {}]   ;;  %s548_s5 = inlined_call_operand.hbm [shape: f32[8,128], index: 5, kind: output, shape index: {0}]   ;;  %s549_s6 = inlined_call_operand.hbm [shape: f32[8,128], index: 6, kind: output, shape index: {1}]  }
   0x1   :  { %v353_v0 = vld [vmem:[%s544_s1] sm:$0xff]   ;;  %309 = vmatprep.subr.bf16.mxu0 %v423_v1  ;;  %329 = vmatprep.subr.bf16.mxu1 %v423_v1  ;;  %v354_v2 = vld [vmem:[%s544_s1 + $0x8] sm:$0xff]   ;;  %v355_v3 = vld [vmem:[%s544_s1 + $0x10] sm:$0xff]  }
   0x2   :  { %310 = vmatpush3.bf16.msra.mxu0 %v353_v0  ;;  %325 = vmatprep.mubr.msk.bf16.mxu0 %vm424_vm0, %v423_v1  ;;  %v361_v4 = vld [vmem:[%s546_s3] sm:$0xff]   ;;  %v356_v5 = vld [vmem:[%s544_s1 + $0x18] sm:$0xff]   ;;  %v362_v6 = vld [vmem:[%s546_s3 + $0x8] sm:$0xff]  }
   0x3   :  { %311 = vmatprep.subr.bf16.mxu0 %v423_v1  ;;  %345 = vmatprep.mubr.msk.bf16.mxu1 %vm424_vm0, %v423_v1  ;;  %v357_v7 = vld [vmem:[%s544_s1 + $0x20] sm:$0xff]   ;;  %v363_v8 = vld [vmem:[%s546_s3 + $0x10] sm:$0xff]  }
   0x4   :  { %330 = vmatpush3.bf16.msra.mxu1 %v361_v4 }
   0x5   :  { %331 = vmatprep.subr.bf16.mxu1 %v423_v1 }
   0x6   :  { %312 = vmatpush3.bf16.msra.mxu0 %v354_v2 }
   0x7   :  { %313 = vmatprep.subr.bf16.mxu0 %v423_v1 }
   0x8   :  { %332 = vmatpush3.bf16.msra.mxu1 %v362_v6 }
   0xa   :  { %314 = vmatpush3.bf16.msra.mxu0 %v355_v3 }
   0xb   :  { %315 = vmatprep.subr.bf16.mxu0 %v423_v1 }
   0xe   :  { %316 = vmatpush3.bf16.msra.mxu0 %v356_v5 }
   0xf   :  { %317 = vmatprep.subr.bf16.mxu0 %v423_v1 }
  0x10   :  { %13 = vsyncpa [#allocation5], 0  ;;  %333 = vmatprep.subr.bf16.mxu1 %v423_v1  ;;  %v358_v9 = vld [vmem:[%s544_s1 + $0x28] sm:$0xff]   ;;  %v364_v10 = vld [vmem:[%s546_s3 + $0x18] sm:$0xff]   ;;  %s425_s7 = smov [#allocation4]  }
  0x11   :  { %334 = vmatpush3.bf16.msra.mxu1 %v363_v8  ;;  %v359_v11 = vld [vmem:[%s544_s1 + $0x30] sm:$0xff]   ;;  %v360_v12 = vld [vmem:[%s544_s1 + $0x38] sm:$0xff]   ;;  %v25_v13 = vld [vmem:[%s543_s0] sm:$0xf]  ;;  %s262_s8 = sshll.u32 %s425_s7, 4  ;;  %s263_s8 = int_to_ptr.vmem [resolvable:$true] %s262_s8 }
  0x12   :  { %318 = vmatpush3.bf16.msra.mxu0 %v357_v7  ;;  %335 = vmatprep.subr.bf16.mxu1 %v423_v1  ;;  %v365_v14 = vld [vmem:[%s546_s3 + $0x20] sm:$0xff]   ;;  %v366_v15 = vld [vmem:[%s546_s3 + $0x28] sm:$0xff]   ;;  %v367_v16 = vld [vmem:[%s546_s3 + $0x30] sm:$0xff]   ;;  %s375_s9 = scalar_lea.vmem %s263_s8, 128  ;;  %p380_p1 = scmp.lt.s32.totalorder %s263_s8, %s263_s8 }
  0x13   :  { %319 = vmatprep.subr.bf16.mxu0 %v423_v1  ;;  %v368_v17 = vld [vmem:[%s546_s3 + $0x38] sm:$0xff]   ;;  %v42_v18 = vld [vmem:[%s545_s2] sm:$0xff]  ;;  %p376_p0 = scmp.ne.s32.totalorder %s263_s8, %s375_s9  ;;  %p381_p2 = scmp.lt.s32.totalorder %s375_s9, %s375_s9 }
  0x15   :  { %336 = vmatpush3.bf16.msra.mxu1 %v364_v10  ;;  %p382_p3 = por %p381_p2, %p380_p1 }
  0x16   :  { %320 = vmatpush3.bf16.msra.mxu0 %v358_v9  ;;  %337 = vmatprep.subr.bf16.mxu1 %v423_v1 }
  0x17   :  { %321 = vmatprep.subr.bf16.mxu0 %v423_v1  ;;  %p383_p4 = pnand %p382_p3, %p376_p0 }
  0x19   :  { %338 = vmatpush3.bf16.msra.mxu1 %v365_v14 }
  0x1a   :  { %322 = vmatpush3.bf16.msra.mxu0 %v359_v11  ;;  %339 = vmatprep.subr.bf16.mxu1 %v423_v1 }
  0x1b   :  { %323 = vmatprep.subr.bf16.mxu0 %v423_v1 }
  0x1d   :  { %340 = vmatpush3.bf16.msra.mxu1 %v366_v15 }
  0x1e   :  { %324 = vmatpush3.bf16.msra.mxu0 %v360_v12  ;;  %341 = vmatprep.subr.bf16.mxu1 %v423_v1 }
  0x21   :  { %326 = vmatmul.mubr.bf16.vlgmr.msra.gmra.mrb[0].mxu0 %v25_v13  ;;  %342 = vmatpush3.bf16.msra.mxu1 %v367_v16 }
  0x22   :  { %343 = vmatprep.subr.bf16.mxu1 %v423_v1 }
  0x25   :  { %344 = vmatpush3.bf16.msra.mxu1 %v368_v17 }
  0xf4   :  { %v125_v19 = vpop.f32.mrb[0].mxu0 }
  0xf5   :  { %v126_v20 = vadd.f32 %v125_v19, %v42_v18  ;;  %v327_v21 = vpop.f32.mrb[1].mxu0 }
  0xf6   :  { %v128_v22 = vpop.f32.mrb[2].mxu0 }
  0xf7   :  { %369 = vtanh.f32 %v126_v20  ;;  %v328_v23 = vpop.f32.mrb[3].mxu0 }
 0x101   :  { %v370_v24 = vpop.eup %369 }
 0x102   :  { %132 = vst [vmem:[#allocation4] sm:$0xff] %v370_v24  ;;  %v133_v25 = vpack.c.bf16 %v370_v24, %v370_v24 }
 0x104   :  { %346 = vmatmul.mubr.bf16.vlgmr.msra.gmra.mrb[0].mxu1 %v133_v25 }
 0x105   :  { %386 = shalt.err (!%p383_p4)
}
 0x106   :  { %s387_s10 = scalar_lea.hbm %s549_s6, 128 }
 0x107   :  { %p388_p5 = scmp.ne.s32.totalorder %s549_s6, %s387_s10  ;;  %p391_p6 = scmp.lt.u32.totalorder %s387_s10, %s549_s6 }
 0x109   :  { %p393_p7 = pnand %p391_p6, %p388_p5 }
 0x10b   :  { %396 = shalt.err (!%p393_p7)
}
 0x10c   :  { %265 = dma.vmem_to_hbm [thread:$0]  %s263_s8, 128, %s549_s6, [#allocation5]   ;;  %v150_v26 = vld [vmem:[%s547_s4] sm:$0xff] }
 0x10d   :  { %s426_s19 = smov [#allocation2]  }
 0x10e   :  { %s252_s20 = sshll.u32 %s426_s19, 4  ;;  %s253_s20 = int_to_ptr.vmem [resolvable:$true] %s252_s20 }
 0x10f   :  { %s397_s6 = scalar_lea.vmem %s253_s20, 128  ;;  %p402_p9 = scmp.lt.s32.totalorder %s253_s20, %s253_s20 }
 0x110   :  { %p398_p8 = scmp.ne.s32.totalorder %s253_s20, %s397_s6  ;;  %p403_p10 = scmp.lt.s32.totalorder %s397_s6, %s397_s6 }
 0x112   :  { %p404_p11 = por %p403_p10, %p402_p9 }
 0x114   :  { %p405_p12 = pnand %p404_p11, %p398_p8 }
 0x1d7   :  { %v233_v27 = vpop.f32.mrb[0].mxu1 }
 0x1d8   :  { %v234_v28 = vadd.f32 %v233_v27, %v150_v26  ;;  %v347_v29 = vpop.f32.mrb[1].mxu1 }
 0x1d9   :  { %v236_v30 = vpop.f32.mrb[2].mxu1 }
 0x1da   :  { %v290_v31 = vmul.f32 -1.442695, %v234_v28  ;;  %v348_v32 = vpop.f32.mrb[3].mxu1 }
 0x1dc   :  { %371 = vpow2.f32 %v290_v31 }
 0x1e6   :  { %v372_v33 = vpop.eup %371 }
 0x1e7   :  { %v242_v34 = vadd.f32 1.0, %v372_v33 }
 0x1e9   :  { %373 = vrcp.f32 %v242_v34 }
 0x1f3   :  { %v374_v35 = vpop.eup %373 }
 0x1f4   :  { %245 = vst [vmem:[#allocation2] sm:$0xff] %v374_v35 }
 0x1f5   :  { %408 = shalt.err (!%p405_p12)
}
 0x1f6   :  { %s409_s22 = scalar_lea.hbm %s548_s5, 128 }
 0x1f7   :  { %p410_p13 = scmp.ne.s32.totalorder %s548_s5, %s409_s22  ;;  %p413_p0 = scmp.lt.u32.totalorder %s409_s22, %s548_s5 }
 0x1f9   :  { %p415_p1 = pnand %p413_p0, %p410_p13 }
 0x1fb   :  { %418 = shalt.err (!%p415_p1)
}
 0x1fc   :  { %255 = dma.vmem_to_hbm [thread:$0]  %s253_s20, 128, %s548_s5, [#allocation3]  }
 0x1fd   :  { %419 = dma.done.wait [#allocation3], 128  }
 0x1fe   :  { %420 = vsyncadd [#allocation3], 4294967168 }
 0x1ff   :  { %421 = dma.done.wait [#allocation5], 128  }
 0x200   :  { %422 = vsyncadd [#allocation5], 4294967168 }
 0x201   :  { %272 = vsyncpa [#allocation3], 1 }
 0x202   :  { %273 = vsyncpa [#allocation5], 1 }

</bundles_post_ra>
